<compile_context>
chip_gen: v6e
topology: v6e:2x2x1
jax: 0.10.0
libtpu: 0.0.40
codegen_flags: <defaults>
</compile_context>

<pallas_src>
import functools

import jax
import jax.numpy as jnp
import numpy as np
from jax.experimental import pallas as pl
from jax.experimental.pallas import tpu as pltpu


def _round_up(a: int, b: int) -> int:
    return (a + b - 1) // b * b


def _adamoe_kernel(x_ref, wgt_ref, bgt_ref, we_ref, be_ref, o_ref, *,
                   num_experts: int, d_pad: int, max_threshold: float):
    x = x_ref[...]                                                    # (TM, H)

    # ---- fused gate + threshold projection: (TM, E+1) ----
    gt = jnp.dot(x, wgt_ref[...], preferred_element_type=jnp.float32)
    gt = gt + bgt_ref[...]
    gate_logits = gt[:, :num_experts]                                 # (TM, E)
    thr_logit = gt[:, num_experts:num_experts + 1]                    # (TM, 1)

    # softmax over experts (exact divide: keeps the >=0 selection decision
    # bit-stable w.r.t. the reference).
    m = jnp.max(gate_logits, axis=-1, keepdims=True)
    ex = jnp.exp(gate_logits - m)
    gate_probs = ex / jnp.sum(ex, axis=-1, keepdims=True)

    # adaptive threshold
    thresholds = jax.nn.sigmoid(thr_logit) * max_threshold

    # adapted gating weights
    adapted = gate_probs - thresholds
    selected = (adapted >= 0.0).astype(jnp.float32)
    weights = adapted * selected
    wsum = jnp.sum(weights, axis=-1, keepdims=True)
    wsum = jnp.where(wsum == 0.0, jnp.ones_like(wsum), wsum)
    weights = weights * pl.reciprocal(wsum, approx=True)              # EUP

    # ---- all experts in one wide matmul: (TM, E*Dp) ----
    y = jnp.dot(x, we_ref[...], preferred_element_type=jnp.float32)
    y = y + be_ref[...]

    # weighted mixture (static unroll over E, elementwise only)
    acc = weights[:, 0:1] * y[:, 0:d_pad]
    for e in range(1, num_experts):
        acc = acc + weights[:, e:e + 1] * y[:, e * d_pad:(e + 1) * d_pad]

    o_ref[...] = acc.astype(o_ref.dtype)


def adamoe_forward(x, gate_w, gate_b, thr_w, thr_b, exp_w, exp_b,
                   max_threshold: float, *, token_tile: int = 256):
    """x: (B, S, H) -> (B, S, D)."""
    B, S, H = x.shape
    E, H2, D = exp_w.shape
    assert H2 == H
    N = B * S

    # sublane granularity by dtype (8 rows for 32-bit, 16 for bf16, 32 for 8-bit)
    sub = {4: 8, 2: 16, 1: 32}.get(jnp.dtype(x.dtype).itemsize, 8)
    tm = _round_up(min(token_tile, _round_up(N, sub)), sub)
    n_pad = _round_up(N, tm)
    d_pad = _round_up(D, 128)                      # lane-dense output stores

    x_flat = x.reshape(N, H)
    if n_pad != N:
        x_flat = jnp.pad(x_flat, ((0, n_pad - N), (0, 0)))

    # fuse gate + threshold projections into one (H, E+1) matmul
    wgt = jnp.concatenate([gate_w, thr_w], axis=1)                    # (H, E+1)
    bgt = jnp.concatenate([gate_b.reshape(1, E), thr_b.reshape(1, 1)],
                          axis=1)                                     # (1, E+1)

    # fuse the E expert matmuls into one (H, E*Dp) matmul (pad D to 128 lanes)
    we = jnp.transpose(exp_w, (1, 0, 2))                              # (H, E, D)
    be = exp_b.reshape(1, E, D)
    if d_pad != D:
        we = jnp.pad(we, ((0, 0), (0, 0), (0, d_pad - D)))
        be = jnp.pad(be, ((0, 0), (0, 0), (0, d_pad - D)))
    we = we.reshape(H, E * d_pad)
    be = be.reshape(1, E * d_pad)

    kernel = functools.partial(_adamoe_kernel, num_experts=E, d_pad=d_pad,
                               max_threshold=float(max_threshold))

    out = pl.pallas_call(
        kernel,
        out_shape=jax.ShapeDtypeStruct((n_pad, d_pad), x.dtype),
        grid_spec=pltpu.PrefetchScalarGridSpec(
            num_scalar_prefetch=0,
            grid=(n_pad // tm,),
            in_specs=[
                pl.BlockSpec((tm, H), lambda i: (i, 0)),          # x tile
                pl.BlockSpec((H, E + 1), lambda i: (0, 0)),       # [gate|thr] W
                pl.BlockSpec((1, E + 1), lambda i: (0, 0)),       # [gate|thr] b
                pl.BlockSpec((H, E * d_pad), lambda i: (0, 0)),   # fused expert W
                pl.BlockSpec((1, E * d_pad), lambda i: (0, 0)),   # fused expert b
            ],
            out_specs=pl.BlockSpec((tm, d_pad), lambda i: (i, 0)),
        ),
        compiler_params=pltpu.CompilerParams(
            dimension_semantics=("parallel",),
            vmem_limit_bytes=32 * 1024 * 1024),
    )(x_flat, wgt, bgt, we, be)

    return out[:N, :D].reshape(B, S, D)


def adamoe_reference(x, gate_w, gate_b, thr_w, thr_b, exp_w, exp_b,
                     max_threshold: float):
    """Pure-JAX reference mirroring the PyTorch forward."""
    B, S, H = x.shape
    E, _, D = exp_w.shape
    xf = x.reshape(-1, H)
    gate_probs = jax.nn.softmax(xf @ gate_w + gate_b, axis=-1)
    thr = jax.nn.sigmoid(xf @ thr_w + thr_b) * max_threshold
    adapted = gate_probs - thr
    selected = (adapted >= 0).astype(x.dtype)
    w = adapted * selected
    ws = jnp.sum(w, axis=-1, keepdims=True)
    ws = jnp.where(ws == 0, jnp.ones_like(ws), ws)
    w = w / ws
    expert_out = jnp.einsum("nh,ehd->ned", xf, exp_w) + exp_b[None]
    out = jnp.einsum("ne,ned->nd", w, expert_out)
    return out.reshape(B, S, D)


if __name__ == "__main__":
    B, S, H, D, E = 2, 8, 32, 32, 4
    MAX_THRESHOLD = 0.25

    key = jax.random.PRNGKey(0)
    kx, kg, kgb, kt, ktb, kw, kb = jax.random.split(key, 7)

    x = jax.random.normal(kx, (B, S, H), dtype=jnp.float32)

    # Deterministic parameter init (nn.Linear-like scaling).
    gate_w = jax.random.uniform(kg, (H, E), jnp.float32, -1, 1) / np.sqrt(H)
    gate_b = jax.random.uniform(kgb, (E,), jnp.float32, -1, 1) / np.sqrt(H)
    thr_w = jax.random.uniform(kt, (H, 1), jnp.float32, -1, 1) / np.sqrt(H)
    thr_b = jax.random.uniform(ktb, (1,), jnp.float32, -1, 1) / np.sqrt(H)
    exp_w = jax.random.uniform(kw, (E, H, D), jnp.float32, -1, 1) / np.sqrt(H)
    exp_b = jax.random.uniform(kb, (E, D), jnp.float32, -1, 1) / np.sqrt(H)

    out = adamoe_forward(x, gate_w, gate_b, thr_w, thr_b, exp_w, exp_b,
                         MAX_THRESHOLD)
    out = jax.block_until_ready(out)

    ref = adamoe_reference(x, gate_w, gate_b, thr_w, thr_b, exp_w, exp_b,
                           MAX_THRESHOLD)
    # Tolerance relaxed (vs f32-exact) only because of the EUP approximate
    # reciprocal used for the gating-weight normalization.
    np.testing.assert_allclose(np.asarray(out), np.asarray(ref),
                               rtol=5e-3, atol=5e-3)
    print("KERNEL_OK")
</pallas_src>

<mosaic_0001>
module attributes {stable_mosaic.version = 11 : i64} {
  func.func @_adamoe_kernel(%arg0: i32, %arg1: memref<16x32xf32, #tpu.memory_space<vmem>>, %arg2: memref<32x5xf32, #tpu.memory_space<vmem>>, %arg3: memref<1x5xf32, #tpu.memory_space<vmem>>, %arg4: memref<32x512xf32, #tpu.memory_space<vmem>>, %arg5: memref<1x512xf32, #tpu.memory_space<vmem>>, %arg6: memref<16x128xf32, #tpu.memory_space<vmem>>) attributes {dimension_semantics = [#tpu.dimension_semantics<parallel>], iteration_bounds = array<i64: 1>, scalar_prefetch = 0 : i64, scratch_operands = 0 : i64, tpu.core_type = #tpu.core_type<tc>, window_params = [{transform_indices = @transform_0, window_bounds = array<i64: 16, 32>}, {pipeline_mode = #tpu.pipeline_mode<synchronous>, transform_indices = @transform_1, window_bounds = array<i64: 32, 5>}, {pipeline_mode = #tpu.pipeline_mode<synchronous>, transform_indices = @transform_2, window_bounds = array<i64: 1, 5>}, {pipeline_mode = #tpu.pipeline_mode<synchronous>, transform_indices = @transform_3, window_bounds = array<i64: 32, 512>}, {pipeline_mode = #tpu.pipeline_mode<synchronous>, transform_indices = @transform_4, window_bounds = array<i64: 1, 512>}, {transform_indices = @transform_5, window_bounds = array<i64: 16, 128>}]} {
    %c0 = arith.constant 0 : index
    %c0_0 = arith.constant 0 : index
    %0 = vector.load %arg1[%c0, %c0_0] : memref<16x32xf32, #tpu.memory_space<vmem>>, vector<16x32xf32>
    %c0_1 = arith.constant 0 : index
    %c0_2 = arith.constant 0 : index
    %1 = vector.load %arg2[%c0_1, %c0_2] : memref<32x5xf32, #tpu.memory_space<vmem>>, vector<32x5xf32>
    %cst = arith.constant dense<0.000000e+00> : vector<16x5xf32>
    %2 = tpu.matmul %0, %1, %cst {dimension_numbers = #tpu.dot_dimension_numbers<[1], [0], [0], [1], [0, 0, 1, 1], [], []>} : vector<16x32xf32>, vector<32x5xf32>, vector<16x5xf32> -> vector<16x5xf32>
    %c0_3 = arith.constant 0 : index
    %c0_4 = arith.constant 0 : index
    %3 = vector.load %arg3[%c0_3, %c0_4] : memref<1x5xf32, #tpu.memory_space<vmem>>, vector<1x5xf32>
    %4 = vector.broadcast %3 : vector<1x5xf32> to vector<16x5xf32>
    %5 = arith.addf %2, %4 : vector<16x5xf32>
    %6 = vector.extract_strided_slice %5 {offsets = [0, 0], sizes = [16, 4], strides = [1, 1]} : vector<16x5xf32> to vector<16x4xf32>
    %7 = vector.extract_strided_slice %5 {offsets = [0, 4], sizes = [16, 1], strides = [1, 1]} : vector<16x5xf32> to vector<16x1xf32>
    %cst_5 = arith.constant dense<0xFF800000> : vector<16xf32>
    %8 = vector.multi_reduction <maximumf>, %6, %cst_5 [1] : vector<16x4xf32> to vector<16xf32>
    %9 = vector.shape_cast %8 : vector<16xf32> to vector<16x1xf32>
    %10 = vector.broadcast %9 : vector<16x1xf32> to vector<16x4xf32>
    %11 = arith.subf %6, %10 : vector<16x4xf32>
    %12 = math.exp %11 : vector<16x4xf32>
    %cst_6 = arith.constant dense<0.000000e+00> : vector<16xf32>
    %13 = vector.multi_reduction <add>, %12, %cst_6 [1] : vector<16x4xf32> to vector<16xf32>
    %14 = vector.shape_cast %13 : vector<16xf32> to vector<16x1xf32>
    %15 = vector.broadcast %14 : vector<16x1xf32> to vector<16x4xf32>
    %16 = arith.divf %12, %15 : vector<16x4xf32>
    %17 = arith.negf %7 : vector<16x1xf32>
    %18 = math.exp %17 : vector<16x1xf32>
    %cst_7 = arith.constant 1.000000e+00 : f32
    %19 = vector.broadcast %cst_7 : f32 to vector<16x1xf32>
    %20 = arith.addf %19, %18 : vector<16x1xf32>
    %21 = arith.divf %19, %20 : vector<16x1xf32>
    %cst_8 = arith.constant 2.500000e-01 : f32
    %22 = vector.broadcast %cst_8 : f32 to vector<16x1xf32>
    %23 = arith.mulf %21, %22 : vector<16x1xf32>
    %24 = vector.broadcast %23 : vector<16x1xf32> to vector<16x4xf32>
    %25 = arith.subf %16, %24 : vector<16x4xf32>
    %cst_9 = arith.constant 0.000000e+00 : f32
    %26 = vector.broadcast %cst_9 : f32 to vector<16x4xf32>
    %27 = arith.cmpf oge, %25, %26 : vector<16x4xf32>
    %28 = arith.extui %27 : vector<16x4xi1> to vector<16x4xi32>
    %29 = arith.sitofp %28 : vector<16x4xi32> to vector<16x4xf32>
    %30 = arith.mulf %25, %29 : vector<16x4xf32>
    %cst_10 = arith.constant dense<0.000000e+00> : vector<16xf32>
    %31 = vector.multi_reduction <add>, %30, %cst_10 [1] : vector<16x4xf32> to vector<16xf32>
    %32 = vector.shape_cast %31 : vector<16xf32> to vector<16x1xf32>
    %cst_11 = arith.constant 0.000000e+00 : f32
    %33 = vector.broadcast %cst_11 : f32 to vector<16x1xf32>
    %34 = arith.cmpf oeq, %32, %33 : vector<16x1xf32>
    %cst_12 = arith.constant 1.000000e+00 : f32
    %35 = vector.broadcast %cst_12 : f32 to vector<16x1xf32>
    %36 = arith.select %34, %35, %32 : vector<16x1xi1>, vector<16x1xf32>
    %37 = tpu.reciprocal %36 {approx = true} : vector<16x1xf32> -> vector<16x1xf32>
    %38 = vector.broadcast %37 : vector<16x1xf32> to vector<16x4xf32>
    %39 = arith.mulf %30, %38 : vector<16x4xf32>
    %c0_13 = arith.constant 0 : index
    %c0_14 = arith.constant 0 : index
    %40 = vector.load %arg4[%c0_13, %c0_14] : memref<32x512xf32, #tpu.memory_space<vmem>>, vector<32x512xf32>
    %cst_15 = arith.constant dense<0.000000e+00> : vector<16x512xf32>
    %41 = tpu.matmul %0, %40, %cst_15 {dimension_numbers = #tpu.dot_dimension_numbers<[1], [0], [0], [1], [0, 0, 1, 1], [], []>} : vector<16x32xf32>, vector<32x512xf32>, vector<16x512xf32> -> vector<16x512xf32>
    %c0_16 = arith.constant 0 : index
    %c0_17 = arith.constant 0 : index
    %42 = vector.load %arg5[%c0_16, %c0_17] : memref<1x512xf32, #tpu.memory_space<vmem>>, vector<1x512xf32>
    %43 = vector.broadcast %42 : vector<1x512xf32> to vector<16x512xf32>
    %44 = arith.addf %41, %43 : vector<16x512xf32>
    %45 = vector.extract_strided_slice %39 {offsets = [0, 0], sizes = [16, 1], strides = [1, 1]} : vector<16x4xf32> to vector<16x1xf32>
    %46 = vector.extract_strided_slice %44 {offsets = [0, 0], sizes = [16, 128], strides = [1, 1]} : vector<16x512xf32> to vector<16x128xf32>
    %47 = vector.broadcast %45 : vector<16x1xf32> to vector<16x128xf32>
    %48 = arith.mulf %47, %46 : vector<16x128xf32>
    %49 = vector.extract_strided_slice %39 {offsets = [0, 1], sizes = [16, 1], strides = [1, 1]} : vector<16x4xf32> to vector<16x1xf32>
    %50 = vector.extract_strided_slice %44 {offsets = [0, 128], sizes = [16, 128], strides = [1, 1]} : vector<16x512xf32> to vector<16x128xf32>
    %51 = vector.broadcast %49 : vector<16x1xf32> to vector<16x128xf32>
    %52 = arith.mulf %51, %50 : vector<16x128xf32>
    %53 = arith.addf %48, %52 : vector<16x128xf32>
    %54 = vector.extract_strided_slice %39 {offsets = [0, 2], sizes = [16, 1], strides = [1, 1]} : vector<16x4xf32> to vector<16x1xf32>
    %55 = vector.extract_strided_slice %44 {offsets = [0, 256], sizes = [16, 128], strides = [1, 1]} : vector<16x512xf32> to vector<16x128xf32>
    %56 = vector.broadcast %54 : vector<16x1xf32> to vector<16x128xf32>
    %57 = arith.mulf %56, %55 : vector<16x128xf32>
    %58 = arith.addf %53, %57 : vector<16x128xf32>
    %59 = vector.extract_strided_slice %39 {offsets = [0, 3], sizes = [16, 1], strides = [1, 1]} : vector<16x4xf32> to vector<16x1xf32>
    %60 = vector.extract_strided_slice %44 {offsets = [0, 384], sizes = [16, 128], strides = [1, 1]} : vector<16x512xf32> to vector<16x128xf32>
    %61 = vector.broadcast %59 : vector<16x1xf32> to vector<16x128xf32>
    %62 = arith.mulf %61, %60 : vector<16x128xf32>
    %63 = arith.addf %58, %62 : vector<16x128xf32>
    %c0_18 = arith.constant 0 : index
    %c0_19 = arith.constant 0 : index
    %64 = vector.load %arg6[%c0_18, %c0_19] : memref<16x128xf32, #tpu.memory_space<vmem>>, vector<16x128xf32>
    tpu.vector_store %arg6[%c0_18, %c0_19], %63 {strides = array<i32>} : memref<16x128xf32, #tpu.memory_space<vmem>>, vector<16x128xf32>,
    return
  }
  func.func @transform_0(%arg0: i32) -> (i32, i32) {
    %c0_i32 = arith.constant 0 : i32
    %c0_i32_0 = arith.constant 0 : i32
    return %arg0, %c0_i32 : i32, i32
  }
  func.func @transform_1(%arg0: i32) -> (i32, i32) {
    %c0_i32 = arith.constant 0 : i32
    %c0_i32_0 = arith.constant 0 : i32
    %c0_i32_1 = arith.constant 0 : i32
    return %c0_i32, %c0_i32_0 : i32, i32
  }
  func.func @transform_2(%arg0: i32) -> (i32, i32) {
    %c0_i32 = arith.constant 0 : i32
    %c0_i32_0 = arith.constant 0 : i32
    %c0_i32_1 = arith.constant 0 : i32
    return %c0_i32, %c0_i32_0 : i32, i32
  }
  func.func @transform_3(%arg0: i32) -> (i32, i32) {
    %c0_i32 = arith.constant 0 : i32
    %c0_i32_0 = arith.constant 0 : i32
    %c0_i32_1 = arith.constant 0 : i32
    return %c0_i32, %c0_i32_0 : i32, i32
  }
  func.func @transform_4(%arg0: i32) -> (i32, i32) {
    %c0_i32 = arith.constant 0 : i32
    %c0_i32_0 = arith.constant 0 : i32
    %c0_i32_1 = arith.constant 0 : i32
    return %c0_i32, %c0_i32_0 : i32, i32
  }
  func.func @transform_5(%arg0: i32) -> (i32, i32) {
    %c0_i32 = arith.constant 0 : i32
    %c0_i32_0 = arith.constant 0 : i32
    return %arg0, %c0_i32 : i32, i32
  }
}

</mosaic_0001>

<bundles_post_ra>
// kernel: tpu_custom_call.1
= control target key start
LH: loop header
LB: loop body
LE: loop exit
PB: predicated region body
PF: predicated region fallthrough
CT: control target
= control target key end

     0   :  { %10 = vsyncpa [#allocation3], 0  ;;  %s690_s0 = inlined_call_operand.vmem [shape: f32[16,32], index: 0, kind: input, shape index: {}]   ;;  %s691_s1 = inlined_call_operand.vmem [shape: f32[32,5], index: 1, kind: input, shape index: {}]   ;;  %s692_s2 = inlined_call_operand.vmem [shape: f32[1,5], index: 2, kind: input, shape index: {}]   ;;  %s693_s3 = inlined_call_operand.hbm [shape: f32[32,512], index: 3, kind: input, shape index: {}]   ;;  %s694_s4 = inlined_call_operand.vmem [shape: f32[1,512], index: 4, kind: input, shape index: {}]   ;;  %s695_s5 = inlined_call_operand.hbm [shape: f32[16,128], index: 5, kind: output, shape index: {}]  }
   0x1   :  { %11 = vsyncpa [#allocation4], 0  ;;  %s582_s18 = smov [#allocation2]  }
   0x2   :  { %s23_s19 = sshll.u32 %s582_s18, 4  ;;  %s24_s19 = int_to_ptr.vmem [resolvable:$true] %s23_s19 }
   0x3   :  { %s546_s20 = scalar_lea.vmem %s24_s19, 2048  ;;  %p551_p1 = scmp.lt.s32.totalorder %s24_s19, %s24_s19 }
   0x4   :  { %p547_p0 = scmp.ne.s32.totalorder %s24_s19, %s546_s20  ;;  %p552_p2 = scmp.lt.s32.totalorder %s546_s20, %s546_s20 }
   0x6   :  { %p553_p3 = por %p552_p2, %p551_p1 }
   0x8   :  { %p554_p4 = pnand %p553_p3, %p547_p0 }
   0xa   :  { %557 = shalt.err (!%p554_p4)
}
   0xb   :  { %s583_s21 = smov 512   ;;  %s584_s22 = smov 32  }
   0xc   :  { %29 = dma.hbm_to_vmem [thread:$0]  %s693_s3, 2048, %s24_s19, [#allocation3], %s583_s21, %s583_s21, %s584_s22  }
   0xd   :  { %578 = dma.done.wait [#allocation3], 2048  }
   0xe   :  { %579 = vsyncadd [#allocation3], 4294965248  ;;  %vm48_vm0 = vcmask 261120   ;;  %v40_v0 = vld [vmem:[%s691_s1 + $0x18] sm:$0xff]  ;;  %v39_v1 = vld [vmem:[%s691_s1 + $0x10] sm:$0xff]  ;;  %v585_v6 = vmov 4  }
   0xf   :  { %477 = vmatprep.subr.mxu0 %v40_v0  ;;  %v636_v2 = vld [vmem:[%s690_s0] sm:$0xff]  ;;  %v38_v3 = vld [vmem:[%s691_s1 + $0x8] sm:$0xff]  ;;  %508 = vset.pattern.permute.xlu0 %v585_v6  ;;  %vm130_vm1 = vcmask 31744   ;;  %v586_v34 = vmov 0.0   ;;  %v216_v40 = vld [vmem:[#allocation2 + $0x78] sm:$0xff] }
  0x10   :  { %478 = vmatpush3.msra.mxu0 %v40_v0  ;;  %485 = vmatprep.mubr.msk.f32.mxu0 %vm48_vm0, %v636_v2  ;;  %v37_v4 = vld [vmem:[%s691_s1] sm:$0xff]  ;;  %v649_v5 = vld [vmem:[%s690_s0 + $0x8] sm:$0xff]  ;;  %v215_v42 = vld [vmem:[#allocation2 + $0x70] sm:$0xff] }
  0x11   :  { %479 = vmatprep.subr.mxu0 %v39_v1  ;;  %509 = vset.pattern.permute.xlu1 %v585_v6  ;;  %v460_v8 = vld [vmem:[%s692_s2] ss:$0 sm:$0xff]  ;;  %v214_v35 = vld [vmem:[#allocation2 + $0x68] sm:$0xff]  ;;  %v212_v44 = vld [vmem:[#allocation2 + $0x58] sm:$0xff]  ;;  %s591_s2 = smov [#allocation5]  }
  0x12   :  { %480 = vmatpush3.msra.mxu0 %v39_v1  ;;  %303 = vmatprep.mubr.f32.mxu1 %v586_v34  ;;  %v213_v36 = vld [vmem:[#allocation2 + $0x60] sm:$0xff]  ;;  %v210_v37 = vld [vmem:[#allocation2 + $0x48] sm:$0xff]  ;;  %v211_v46 = vld [vmem:[#allocation2 + $0x50] sm:$0xff] }
  0x13   :  { %481 = vmatprep.subr.mxu0 %v38_v3  ;;  %263 = vmatprep.subr.mxu1 %v214_v35  ;;  %v209_v38 = vld [vmem:[#allocation2 + $0x40] sm:$0xff]  ;;  %v206_v39 = vld [vmem:[#allocation2 + $0x28] sm:$0xff]  ;;  %v208_v47 = vld [vmem:[#allocation2 + $0x38] sm:$0xff] }
  0x14   :  { %482 = vmatpush3.msra.mxu0 %v38_v3  ;;  %264 = vmatpush1.msra.mxu1 %v213_v36  ;;  %v205_v41 = vld [vmem:[#allocation2 + $0x20] sm:$0xff]  ;;  %v202_v43 = vld [vmem:[#allocation2 + $0x8] sm:$0xff]  ;;  %v207_v48 = vld [vmem:[#allocation2 + $0x30] sm:$0xff]  ;;  %v587_v3 = vmov 1  }
  0x15   :  { %483 = vmatprep.subr.mxu0 %v37_v4  ;;  %265 = vmatprep.subr.mxu1 %v210_v37  ;;  %v201_v45 = vld [vmem:[#allocation2] sm:$0xff]  ;;  %v204_v49 = vld [vmem:[#allocation2 + $0x18] sm:$0xff]  ;;  %v203_v50 = vld [vmem:[#allocation2 + $0x10] sm:$0xff] }
  0x16   :  { %484 = vmatpush3.msra.mxu0 %v37_v4  ;;  %266 = vmatpush1.msra.mxu1 %v209_v38  ;;  %v588_v4 = vmov 0  }
  0x17   :  { %486 = vmatmul.mubr.msk.f32.vlgmr.msra.gmra.mxu0 %vm48_vm0, %v649_v5  ;;  %340 = vmatprep.subr.mxu0 %v216_v40 }
  0x18   :  { %380 = vmatprep.mubr.f32.mxu0 %v586_v34  ;;  %341 = vmatpush1.msra.mxu0 %v215_v42 }
  0x19   :  { %267 = vmatprep.subr.mxu1 %v206_v39  ;;  %342 = vmatprep.subr.mxu0 %v212_v44 }
  0x1a   :  { %268 = vmatpush1.msra.mxu1 %v205_v41  ;;  %343 = vmatpush1.msra.mxu0 %v211_v46 }
  0x1b   :  { %269 = vmatprep.subr.mxu1 %v202_v43  ;;  %344 = vmatprep.subr.mxu0 %v208_v47 }
  0x1c   :  { %270 = vmatpush1.msra.mxu1 %v201_v45  ;;  %345 = vmatpush1.msra.mxu0 %v207_v48 }
  0x1d   :  { %467 = vmatmul.mubr.msk.f32.vlgmr.msra.gmra.mxu1 %vm48_vm0, %v636_v2  ;;  %488 = vmatprep.subr.mxu1 %v216_v40 }
  0x1e   :  { %309 = vmatprep.mubr.f32.mxu1 %v586_v34  ;;  %492 = vmatpush1.msra.mxu1 %v215_v42 }
  0x1f   :  { %489 = vmatprep.subr.mxu1 %v212_v44  ;;  %346 = vmatprep.subr.mxu0 %v204_v49 }
  0x20   :  { %493 = vmatpush1.msra.mxu1 %v211_v46  ;;  %347 = vmatpush1.msra.mxu0 %v203_v50 }
  0x21   :  { %468 = vmatmul.mubr.msk.f32.gmra.mxu1 %vm48_vm0, %v649_v5  ;;  %490 = vmatprep.subr.mxu1 %v208_v47 }
  0x22   :  { %494 = vmatpush1.msra.mxu1 %v207_v48  ;;  %386 = vmatprep.mubr.f32.mxu1 %v586_v34 }
  0x23   :  { %491 = vmatprep.subr.mxu1 %v204_v49  ;;  %469 = vmatmul.mubr.msk.f32.vlgmr.msra.gmra.mxu0 %vm48_vm0, %v636_v2 }
  0x24   :  { %495 = vmatpush1.msra.mxu1 %v203_v50 }
  0x25   :  { %470 = vmatmul.mubr.msk.f32.vlgmr.msra.gmra.mxu1 %vm48_vm0, %v649_v5 }
  0xd7   :  { %v487_v7 = vpop.f32.mrf.mxu0 }
  0xd8   :  { %v127_v11 = vadd.f32 %v487_v7, %v460_v8 }
  0xd9   :  { %v121_v9 = vpop.f32.mrf.mxu0 }
  0xda   :  { %v122_v10 = vadd.f32 %v460_v8, %v121_v9  ;;  %v134_v14 = vsel %vm130_vm1, %v127_v11, -inf  ;;  %v464_v20 = vmul.f32 -1.442695, %v127_v11 }
  0xdc   :  { %v463_v12 = vmul.f32 -1.442695, %v122_v10  ;;  %v131_v13 = vsel %vm130_vm1, %v122_v10, -inf }
  0xdd   :  { %132 = vmax.xlane.f32.xlu0 %v131_v13 }
  0xde   :  { %518 = vpow2.f32 %v463_v12  ;;  %v590_v12 = vmov 3  }
  0xe1   :  { %135 = vmax.xlane.f32.xlu0 %v134_v14 }
  0xeb   :  { %v519_v15 = vpop.eup %518 }
  0xec   :  { %v159_v16 = vadd.f32 1.0, %v519_v15 }
  0xee   :  { %520 = vrcp.f32 %v159_v16  ;;  %v219_v16 = vlaneseq }
  0xef   :  { %522 = vpow2.f32 %v464_v20 }
  0xfb   :  { %v521_v17 = vpop.eup %520 }
  0xfc   :  { %v165_v18 = vmul.f32 0.25, %v521_v17  ;;  %v523_v26 = vpop.eup %522  ;;  %v305_v17 = vpop.f32.mrf.mxu1 }
  0xfd   :  { %v160_v29 = vadd.f32 1.0, %v523_v26 }
  0xfe   :  { %169 = vperm.xlu0 %508, %v165_v18   ;;  %v307_v20 = vpop.f32.mrf.mxu1 }
 0x100   :  { %v311_v26 = vpop.f32.mrf.mxu1 }
 0x102   :  { %511 = vset.pattern.permute.xlu0 %v587_v3 }
 0x166   :  { %v133_v19 = vpop.xlane.xlu0 %132 }
 0x167   :  { %v137_v21 = vsub.f32 %v122_v10, %v133_v19  ;;  %v220_v19 = vshrl.u32 %v219_v16, 7 }
 0x169   :  { %v139_v24 = vmul.f32 1.442695, %v137_v21  ;;  %v225_v21 = vsub.s32 1, %v220_v19 }
 0x16a   :  { %v136_v22 = vpop.xlane.xlu0 %135 }
 0x16b   :  { %v138_v23 = vsub.f32 %v127_v11, %v136_v22  ;;  %v589_v11 = vmov 2  }
 0x16d   :  { %v141_v25 = vmul.f32 1.442695, %v138_v23  ;;  %v217_v23 = vld [vmem:[%s694_s4] sm:$0xf]  ;;  %s448_s4 = sshll.u32 %s591_s2, 4  ;;  %s449_s4 = int_to_ptr.vmem [resolvable:$true] %s448_s4 }
 0x16e   :  { %s558_s13 = scalar_lea.vmem %s449_s4, 256  ;;  %p563_p6 = scmp.lt.s32.totalorder %s449_s4, %s449_s4 }
 0x16f   :  { %524 = vpow2.f32 %v141_v25  ;;  %v229_v25 = vsub.s32 2, %v220_v19  ;;  %p559_p5 = scmp.ne.s32.totalorder %s449_s4, %s558_s13  ;;  %p564_p7 = scmp.lt.s32.totalorder %s558_s13, %s558_s13 }
 0x170   :  { %526 = vpow2.f32 %v139_v24  ;;  %v221_v24 = vsub.s32 0, %v220_v19 }
 0x171   :  { %528 = vrcp.f32 %v160_v29  ;;  %p565_p8 = por %p564_p7, %p563_p6 }
 0x173   :  { %p566_p9 = pnand %p565_p8, %p559_p5 }
 0x179   :  { %v170_v59 = vpop.permute.xlu0 %169 }
 0x17c   :  { %v658_v27 = vpop.eup %524 }
 0x17d   :  { %v146_v28 = vsel %vm130_vm1, %v658_v27, 0.0  ;;  %v662_v30 = vpop.eup %526 }
 0x17e   :  { %147 = vadd.xlane.f32.xlu1 %v146_v28  ;;  %v143_v31 = vsel %vm130_vm1, %v662_v30, 0.0  ;;  %v529_v32 = vpop.eup %528  ;;  %v233_v28 = vsub.s32 3, %v220_v19 }
 0x17f   :  { %v166_v33 = vmul.f32 0.25, %v529_v32 }
 0x180   :  { %v234_v37 = vrot.slane %v217_v23, %v233_v28 }
 0x182   :  { %144 = vadd.xlane.f32.xlu1 %v143_v31  ;;  %v222_v31 = vrot.slane %v217_v23, %v221_v24 }
 0x184   :  { %v306_v35 = vadd.f32 %v305_v17, %v222_v31  ;;  %v312_v40 = vadd.f32 %v311_v26, %v222_v31 }
 0x193   :  { %174 = vperm.xlu1 %509, %v166_v33   ;;  %v230_v33 = vrot.slane %v217_v23, %v229_v25 }
 0x197   :  { %510 = vset.pattern.permute.xlu1 %v588_v4 }
 0x207   :  { %v148_v51 = vpop.xlane.xlu1 %147 }
 0x208   :  { %530 = vrcp.f32 %v148_v51 }
 0x20b   :  { %v145_v52 = vpop.xlane.xlu1 %144 }
 0x20c   :  { %532 = vrcp.f32 %v145_v52 }
 0x20f   :  { %v175_v55 = vpop.permute.xlu1 %174 }
 0x215   :  { %v531_v53 = vpop.eup %530 }
 0x216   :  { %v152_v54 = vmul.f32 %v531_v53, %v658_v27  ;;  %v226_v27 = vrot.slane %v217_v23, %v225_v21 }
 0x218   :  { %v178_v56 = vsub.f32 %v152_v54, %v175_v55  ;;  %v308_v32 = vadd.f32 %v307_v20, %v226_v27 }
 0x219   :  { %v533_v57 = vpop.eup %532 }
 0x21a   :  { %vm180_vm2 = vcmp.ge.f32.partialorder %v178_v56, 0.0  ;;  %v150_v58 = vmul.f32 %v533_v57, %v662_v30  ;;  %v382_v30 = vpop.f32.mrf.mxu0 }
 0x21b   :  { %v466_v60 = vsel %vm180_vm2, 1.0, %v586_v34  ;;  %v383_v36 = vadd.f32 %v382_v30, %v230_v33 }
 0x21c   :  { %v186_v61 = vmul.f32 %v466_v60, %v178_v56  ;;  %v177_v62 = vsub.f32 %v150_v58, %v170_v59  ;;  %v384_v39 = vpop.f32.mrf.mxu0 }
 0x21d   :  { %v385_v48 = vadd.f32 %v384_v39, %v234_v37 }
 0x21e   :  { %v190_v63 = vsel %vm130_vm1, %v186_v61, 0.0  ;;  %vm179_vm3 = vcmp.ge.f32.partialorder %v177_v62, 0.0 }
 0x21f   :  { %191 = vadd.xlane.f32.xlu0 %v190_v63  ;;  %v465_v0 = vsel %vm179_vm3, 1.0, %v586_v34  ;;  %v313_v34 = vpop.f32.mrf.mxu1 }
 0x220   :  { %v185_v1 = vmul.f32 %v465_v0, %v177_v62  ;;  %v314_v41 = vadd.f32 %v313_v34, %v226_v27 }
 0x221   :  { %v388_v38 = vpop.f32.mrf.mxu1 }
 0x222   :  { %v187_v2 = vsel %vm130_vm1, %v185_v1, 0.0  ;;  %v389_v45 = vadd.f32 %v388_v38, %v230_v33 }
 0x223   :  { %188 = vadd.xlane.f32.xlu1 %v187_v2  ;;  %v390_v52 = vpop.f32.mrf.mxu1 }
 0x224   :  { %v391_v58 = vadd.f32 %v390_v52, %v234_v37 }
 0x2a8   :  { %v192_v5 = vpop.xlane.xlu0 %191 }
 0x2a9   :  { %vm194_vm4 = vcmp.eq.f32.partialorder %v192_v5, 0.0 }
 0x2aa   :  { %v196_v6 = vsel %vm194_vm4, 1.0, %v192_v5 }
 0x2ab   :  { %534 = vrcp.f32 %v196_v6 }
 0x2ac   :  { %v189_v7 = vpop.xlane.xlu1 %188 }
 0x2ad   :  { %vm193_vm5 = vcmp.eq.f32.partialorder %v189_v7, 0.0 }
 0x2ae   :  { %v195_v8 = vsel %vm193_vm5, 1.0, %v189_v7 }
 0x2af   :  { %536 = vrcp.f32 %v195_v8 }
 0x2b8   :  { %v535_v9 = vpop.eup %534 }
 0x2b9   :  { %v200_v10 = vmul.f32 %v535_v9, %v186_v61 }
 0x2bb   :  { %410 = vperm.xlu0 %511, %v200_v10   ;;  %400 = vperm.xlu1 %510, %v200_v10  }
 0x2bc   :  { %v537_v13 = vpop.eup %536 }
 0x2bd   :  { %v199_v14 = vmul.f32 %v537_v13, %v185_v1 }
 0x2bf   :  { %512 = vset.pattern.permute.xlu1 %v589_v11  ;;  %517 = vset.pattern.permute.xlu0 %v590_v12 }
 0x2c0   :  { %422 = vperm.xlu1 %512, %v200_v10  }
 0x2c4   :  { %513 = vset.pattern.permute.xlu1 %v588_v4 }
 0x2c5   :  { %395 = vperm.xlu1 %513, %v199_v14  }
 0x2c9   :  { %514 = vset.pattern.permute.xlu1 %v587_v3 }
 0x2ca   :  { %406 = vperm.xlu1 %514, %v199_v14  }
 0x2ce   :  { %515 = vset.pattern.permute.xlu1 %v589_v11 }
 0x2cf   :  { %418 = vperm.xlu1 %515, %v199_v14  }
 0x2d3   :  { %516 = vset.pattern.permute.xlu1 %v590_v12 }
 0x2d4   :  { %430 = vperm.xlu1 %516, %v199_v14  }
 0x2d8   :  { %434 = vperm.xlu1 %516, %v200_v10  }
 0x336   :  { %v401_v15 = vpop.permute.xlu1 %400  ;;  %v411_v44 = vpop.permute.xlu0 %410 }
 0x337   :  { %v414_v49 = vmul.f32 %v411_v44, %v314_v41  ;;  %v404_v50 = vmul.f32 %v401_v15, %v312_v40 }
 0x339   :  { %v416_v57 = vadd.f32 %v414_v49, %v404_v50 }
 0x33b   :  { %v423_v18 = vpop.permute.xlu1 %422 }
 0x33c   :  { %v426_v54 = vmul.f32 %v423_v18, %v389_v45 }
 0x33e   :  { %v428_v61 = vadd.f32 %v426_v54, %v416_v57 }
 0x340   :  { %v396_v22 = vpop.permute.xlu1 %395 }
 0x341   :  { %v403_v46 = vmul.f32 %v396_v22, %v306_v35 }
 0x345   :  { %v407_v29 = vpop.permute.xlu1 %406 }
 0x346   :  { %v413_v42 = vmul.f32 %v407_v29, %v308_v32 }
 0x348   :  { %v415_v51 = vadd.f32 %v413_v42, %v403_v46 }
 0x34a   :  { %v419_v43 = vpop.permute.xlu1 %418 }
 0x34b   :  { %v425_v47 = vmul.f32 %v419_v43, %v383_v36 }
 0x34d   :  { %v427_v55 = vadd.f32 %v425_v47, %v415_v51 }
 0x34f   :  { %v431_v53 = vpop.permute.xlu1 %430 }
 0x350   :  { %v437_v56 = vmul.f32 %v431_v53, %v385_v48 }
 0x352   :  { %v439_v59 = vadd.f32 %v437_v56, %v427_v55 }
 0x353   :  { %v435_v60 = vpop.permute.xlu1 %434 }
 0x354   :  { %441 = vst [vmem:[#allocation5] sm:$0xff] %v439_v59  ;;  %v438_v62 = vmul.f32 %v435_v60, %v391_v58 }
 0x356   :  { %v440_v63 = vadd.f32 %v438_v62, %v428_v61 }
 0x358   :  { %442 = vst [vmem:[#allocation5 + $0x8] sm:$0xff] %v440_v63 }
 0x359   :  { %569 = shalt.err (!%p566_p9)
}
 0x35a   :  { %s592_s14 = smov 128   ;;  %s593_s15 = smov 8  }
 0x35b   :  { %454 = dma.vmem_to_hbm [thread:$0]  %s449_s4, 256, %s695_s5, [#allocation4], %s592_s14, %s592_s14, %s593_s15  }
 0x35c   :  { %580 = dma.done.wait [#allocation4], 256  }
 0x35d   :  { %581 = vsyncadd [#allocation4], 4294967040 }
 0x35e   :  { %458 = vsyncpa [#allocation3], 1 }
 0x35f   :  { %459 = vsyncpa [#allocation4], 1 }

</bundles_post_ra>
